<compile_context>
chip_gen: v5e
topology: v5e:2x2
jax: 0.10.0
libtpu: 0.0.40
codegen_flags: <defaults>
</compile_context>

<pallas_src>
import jax
import jax.numpy as jnp
from jax.experimental import pallas as pl
from jax.experimental.pallas import tpu as pltpu


def _sse_partial_kernel(x_ref, t_ref, partial_ref):
    # Load the (tr, wl) tiles, diff in f32.
    x = x_ref[...].astype(jnp.float32)
    t = t_ref[...].astype(jnp.float32)
    d = x - t
    sq = d * d
    tr, wl = sq.shape
    # Fold sublane groups of 8 and accumulate with pure VPU vreg adds:
    # (tr, wl) -> (tr//8, 8, wl) -> sum over axis 0 -> (8, wl).
    # The final cross-lane/cross-sublane reduction happens in the wrapper.
    partial_ref[...] = jnp.sum(sq.reshape(tr // 8, 8, wl), axis=0)


def content_loss(x, target, *, lane_width=512, max_block_rows=512):
    """Returns (input_passthrough, mse_loss_scalar). x, target: same shape/dtype."""
    assert x.shape == target.shape and x.dtype == target.dtype
    total = x.size
    itemsize = jnp.dtype(x.dtype).itemsize

    # --- lane-dense reshape: flatten and view as (rows, lane_width) ---------
    xf = x.reshape(-1)
    tf = target.reshape(-1)
    lane_pad = (-total) % lane_width
    if lane_pad:
        xf = jnp.pad(xf, (0, lane_pad))
        tf = jnp.pad(tf, (0, lane_pad))
    rows = xf.size // lane_width

    # --- pick a row tile: multiple of 8 sublanes, capped at max_block_rows --
    tr = min(max_block_rows, ((rows + 7) // 8) * 8)
    row_pad = (-rows) % tr
    if row_pad:
        xf = jnp.pad(xf, (0, row_pad * lane_width))
        tf = jnp.pad(tf, (0, row_pad * lane_width))
        rows += row_pad
    x2 = xf.reshape(rows, lane_width)
    t2 = tf.reshape(rows, lane_width)
    num_blocks = rows // tr

    partials_shape = (num_blocks * 8, lane_width)
    cost = pl.CostEstimate(
        flops=3 * total,  # sub + mul + add
        transcendentals=0,
        bytes_accessed=2 * total * itemsize
        + partials_shape[0] * partials_shape[1] * 4,
    )

    partials = pl.pallas_call(
        _sse_partial_kernel,
        out_shape=jax.ShapeDtypeStruct(partials_shape, jnp.float32),
        grid_spec=pltpu.PrefetchScalarGridSpec(
            num_scalar_prefetch=0,
            grid=(num_blocks,),
            in_specs=[
                pl.BlockSpec((tr, lane_width), lambda i: (i, 0)),
                pl.BlockSpec((tr, lane_width), lambda i: (i, 0)),
            ],
            out_specs=pl.BlockSpec((8, lane_width), lambda i: (i, 0)),
        ),
        compiler_params=pltpu.CompilerParams(
            # Each grid step writes an independent partial block -> parallel
            # (uses both TensorCores on v7x megacore).
            dimension_semantics=("parallel",),
        ),
        cost_estimate=cost,
    )(x2, t2)

    loss = jnp.sum(partials) / jnp.float32(total)
    # Passthrough: the module returns its input unchanged; no kernel copy needed.
    return x, loss


if __name__ == "__main__":
    key = jax.random.PRNGKey(0)
    k_x, k_t = jax.random.split(key)

    # Small NCHW feature maps, consistent with the module's usage inside a CNN.
    x = jax.random.normal(k_x, (2, 4, 16, 16), dtype=jnp.float32)
    target = jax.random.normal(k_t, (2, 4, 16, 16), dtype=jnp.float32)  # "detached" target

    out, loss = content_loss(x, target)
    out, loss = jax.block_until_ready((out, loss))

    # Reference check (pure JAX)
    ref_loss = jnp.mean((x - target) ** 2)
    assert jnp.allclose(out, x), "passthrough output mismatch"
    assert jnp.allclose(loss, ref_loss, rtol=1e-6, atol=1e-6), (loss, ref_loss)

    print("KERNEL_OK")
</pallas_src>

<mosaic_0001>
module attributes {stable_mosaic.version = 11 : i64} {
  func.func @_sse_partial_kernel(%arg0: i32, %arg1: memref<8x512xf32, #tpu.memory_space<vmem>>, %arg2: memref<8x512xf32, #tpu.memory_space<vmem>>, %arg3: memref<8x512xf32, #tpu.memory_space<vmem>>) attributes {dimension_semantics = [#tpu.dimension_semantics<parallel>], iteration_bounds = array<i64: 1>, scalar_prefetch = 0 : i64, scratch_operands = 0 : i64, tpu.core_type = #tpu.core_type<tc>, window_params = [{transform_indices = @transform_0, window_bounds = array<i64: 8, 512>}, {transform_indices = @transform_1, window_bounds = array<i64: 8, 512>}, {transform_indices = @transform_2, window_bounds = array<i64: 8, 512>}]} {
    %c0 = arith.constant 0 : index
    %c0_0 = arith.constant 0 : index
    %0 = vector.load %arg1[%c0, %c0_0] : memref<8x512xf32, #tpu.memory_space<vmem>>, vector<8x512xf32>
    %c0_1 = arith.constant 0 : index
    %c0_2 = arith.constant 0 : index
    %1 = vector.load %arg2[%c0_1, %c0_2] : memref<8x512xf32, #tpu.memory_space<vmem>>, vector<8x512xf32>
    %2 = arith.subf %0, %1 : vector<8x512xf32>
    %3 = arith.mulf %2, %2 : vector<8x512xf32>
    %4 = vector.shape_cast %3 : vector<8x512xf32> to vector<1x8x512xf32>
    %cst = arith.constant dense<0.000000e+00> : vector<8x512xf32>
    %5 = vector.multi_reduction <add>, %4, %cst [0] : vector<1x8x512xf32> to vector<8x512xf32>
    %c0_3 = arith.constant 0 : index
    %c0_4 = arith.constant 0 : index
    %6 = vector.load %arg3[%c0_3, %c0_4] : memref<8x512xf32, #tpu.memory_space<vmem>>, vector<8x512xf32>
    tpu.vector_store %arg3[%c0_3, %c0_4], %5 {strides = array<i32>} : memref<8x512xf32, #tpu.memory_space<vmem>>, vector<8x512xf32>,
    return
  }
  func.func @transform_0(%arg0: i32) -> (i32, i32) {
    %c0_i32 = arith.constant 0 : i32
    %c0_i32_0 = arith.constant 0 : i32
    return %arg0, %c0_i32 : i32, i32
  }
  func.func @transform_1(%arg0: i32) -> (i32, i32) {
    %c0_i32 = arith.constant 0 : i32
    %c0_i32_0 = arith.constant 0 : i32
    return %arg0, %c0_i32 : i32, i32
  }
  func.func @transform_2(%arg0: i32) -> (i32, i32) {
    %c0_i32 = arith.constant 0 : i32
    %c0_i32_0 = arith.constant 0 : i32
    return %arg0, %c0_i32 : i32, i32
  }
}

</mosaic_0001>

<bundles_post_ra>
// kernel: tpu_custom_call.1
= control target key start
LH: loop header
LB: loop body
LE: loop exit
PB: predicated region body
PF: predicated region fallthrough
CT: control target
= control target key end

     0   :  { %7 = vsyncpa [#allocation3], 0  ;;  %s190_s0 = inlined_call_operand.hbm [shape: f32[8,512], index: 0, kind: input, shape index: {}]   ;;  %s191_s1 = inlined_call_operand.hbm [shape: f32[8,512], index: 1, kind: input, shape index: {}]   ;;  %s192_s2 = inlined_call_operand.hbm [shape: f32[8,512], index: 2, kind: output, shape index: {}]  }
   0x1   :  { %8 = vsyncpa [#allocation6], 0 }
   0x2   :  { %9 = vsyncpa [#allocation4], 0  ;;  %s15_s11 = sshll.u32 %s190_s0, 4  ;;  %s163_s12 = smov [#allocation2]   ;;  %s16_s11 = int_to_ptr.hbm [resolvable:$true] %s15_s11 }
   0x3   :  { %s17_s13 = sshll.u32 %s163_s12, 4  ;;  %s26_s16 = sshll.u32 %s191_s1, 4  ;;  %s18_s13 = int_to_ptr.vmem [resolvable:$true] %s17_s13  ;;  %s27_s16 = int_to_ptr.hbm [resolvable:$true] %s26_s16 }
   0x4   :  { %20 = dma.hbm_to_vmem [thread:$0]  %s16_s11, 512, %s18_s13, [#allocation3]  }
   0x5   :  { %s164_s17 = smov [#allocation5]  }
   0x6   :  { %s28_s18 = sshll.u32 %s164_s17, 4  ;;  %s29_s18 = int_to_ptr.vmem [resolvable:$true] %s28_s18 }
   0x7   :  { %31 = dma.hbm_to_vmem [thread:$0]  %s27_s16, 512, %s29_s18, [#allocation6]  }
   0x8   :  { %157 = dma.done.wait [#allocation3], 512  }
   0x9   :  { %158 = vsyncadd [#allocation3], 4294966784 }
   0xa   :  { %159 = dma.done.wait [#allocation6], 512  }
   0xb   :  { %160 = vsyncadd [#allocation6], 4294966784  ;;  %v40_v0 = vld [vmem:[#allocation2] sm:$0xff]  ;;  %v41_v2 = vld [vmem:[#allocation2 + $0x8] sm:$0xff]  ;;  %s165_s0 = smov [#allocation7]   ;;  %s71_s21 = sshll.u32 %s192_s2, 4  ;;  %s72_s21 = int_to_ptr.hbm [resolvable:$true] %s71_s21 }
   0xc   :  { %v44_v1 = vld [vmem:[#allocation5] sm:$0xff]  ;;  %v45_v4 = vld [vmem:[#allocation5 + $0x8] sm:$0xff]  ;;  %v42_v5 = vld [vmem:[#allocation2 + $0x10] sm:$0xff]  ;;  %s69_s1 = sshll.u32 %s165_s0, 4  ;;  %s70_s1 = int_to_ptr.vmem [resolvable:$true] %s69_s1 }
   0xd   :  { %v48_v3 = vsub.f32 %v40_v0, %v44_v1  ;;  %v46_v6 = vld [vmem:[#allocation5 + $0x10] sm:$0xff]  ;;  %v49_v7 = vsub.f32 %v41_v2, %v45_v4  ;;  %v43_v9 = vld [vmem:[#allocation2 + $0x18] sm:$0xff] }
   0xe   :  { %v50_v8 = vsub.f32 %v42_v5, %v46_v6  ;;  %v47_v10 = vld [vmem:[#allocation5 + $0x18] sm:$0xff] }
   0xf   :  { %v52_v11 = vmul.f32 %v48_v3, %v48_v3  ;;  %v51_v12 = vsub.f32 %v43_v9, %v47_v10  ;;  %v53_v13 = vmul.f32 %v49_v7, %v49_v7 }
  0x10   :  { %v54_v14 = vmul.f32 %v50_v8, %v50_v8 }
  0x11   :  { %60 = vst [vmem:[#allocation7] sm:$0xff] %v52_v11  ;;  %v55_v15 = vmul.f32 %v51_v12, %v51_v12 }
  0x12   :  { %61 = vst [vmem:[#allocation7 + $0x8] sm:$0xff] %v53_v13 }
  0x13   :  { %62 = vst [vmem:[#allocation7 + $0x10] sm:$0xff] %v54_v14 }
  0x14   :  { %63 = vst [vmem:[#allocation7 + $0x18] sm:$0xff] %v55_v15 }
  0x15   :  { %74 = dma.vmem_to_hbm [thread:$0]  %s70_s1, 512, %s72_s21, [#allocation4]  }
  0x16   :  { %161 = dma.done.wait [#allocation4], 512  }
  0x17   :  { %162 = vsyncadd [#allocation4], 4294966784 }
  0x18   :  { %79 = vsyncpa [#allocation3], 1 }
  0x19   :  { %80 = vsyncpa [#allocation6], 1 }
  0x1a   :  { %81 = vsyncpa [#allocation4], 1 }

</bundles_post_ra>
